<compile_context>
chip_gen: v6e
topology: v6e:2x2x1
jax: 0.10.0
libtpu: 0.0.40
codegen_flags: <defaults>
</compile_context>

<pallas_src>
import jax
import jax.numpy as jnp
from jax.experimental import pallas as pl
from jax.experimental.pallas import tpu as pltpu


_VMEM_LIMIT_BYTES = 48 * 1024 * 1024  # explicit budget, leaves headroom on v7x (64 MiB)


def _round_up(x, m):
    return ((x + m - 1) // m) * m


def _pick_tiles(n, s, tn, ts):
    # Sublane (second-to-last) tiles in multiples of 8, lane tiles in multiples
    # of 128 (256-multiples preferred for the v6e/v7x 256x256 MXU).
    if tn is None:
        tn = 256 if n >= 256 else _round_up(n, 8)
    if ts is None:
        ts = 512 if s >= 512 else _round_up(s, 128)
    return tn, ts


# ---------------------------------------------------------------------------
# Standalone RBF kernel matrix:  K = exp(-gamma * ||x1[:,None] - x2||^2)
# ---------------------------------------------------------------------------
def _rbf_tile_kernel(x1_ref, x2t_ref, gx1_ref, gx2_ref, o_ref):
    # x1_ref: (tn, D) native dtype, x2t_ref: (D, ts) = (2*gamma)*x2^T,
    # gx1_ref: (tn, 1) = -gamma*||x1||^2, gx2_ref: (1, ts) = -gamma*||x2||^2.
    cross = jnp.dot(x1_ref[...], x2t_ref[...],
                    preferred_element_type=jnp.float32)          # MXU
    # exponent = -gamma*||x1-x2||^2, clamped at 0 (true distance is >= 0).
    expo = jnp.minimum(gx1_ref[...] + gx2_ref[...] + cross, 0.0)
    if o_ref.dtype == jnp.bfloat16:
        # bf16 exp: packed EUP vregs on v6e/v7x (the likely bottleneck for small D).
        o_ref[...] = jnp.exp(expo.astype(jnp.bfloat16))
    else:
        o_ref[...] = jnp.exp(expo).astype(o_ref.dtype)


def rbf_kernel_pallas(x1, x2, gamma, *, tn=None, ts=None):
    """exp(-gamma * ||x1[:,None] - x2||^2); x1:(N,D), x2:(S,D) -> (N,S)."""
    x1 = jnp.asarray(x1)
    x2 = jnp.asarray(x2)
    N, D = x1.shape
    S, D2 = x2.shape
    assert D == D2, "feature dims must match"
    out_dtype = x1.dtype

    tn, ts = _pick_tiles(N, S, tn, ts)
    n_pad = _round_up(N, tn)
    s_pad = _round_up(S, ts)

    g = jnp.float32(gamma)
    x1_f = x1.astype(jnp.float32)
    x2_f = x2.astype(jnp.float32)

    # Matmul operands in native dtype (bf16 stays bf16); gamma folded in.
    x1_mm = jnp.pad(x1, ((0, n_pad - N), (0, 0)))
    x2t_mm = jnp.pad(((2.0 * g) * x2_f.T).astype(x1.dtype),
                     ((0, 0), (0, s_pad - S)))
    gx1 = jnp.pad(-g * jnp.sum(x1_f * x1_f, axis=1, keepdims=True),
                  ((0, n_pad - N), (0, 0)))
    gx2 = jnp.pad((-g * jnp.sum(x2_f * x2_f, axis=1))[None, :],
                  ((0, 0), (0, s_pad - S)))

    grid = (n_pad // tn, s_pad // ts)
    out = pl.pallas_call(
        _rbf_tile_kernel,
        out_shape=jax.ShapeDtypeStruct((n_pad, s_pad), out_dtype),
        grid=grid,
        in_specs=[
            pl.BlockSpec((tn, D), lambda i, j: (i, 0)),
            pl.BlockSpec((D, ts), lambda i, j: (0, j)),
            pl.BlockSpec((tn, 1), lambda i, j: (i, 0)),
            pl.BlockSpec((1, ts), lambda i, j: (0, j)),
        ],
        out_specs=pl.BlockSpec((tn, ts), lambda i, j: (i, j)),
        compiler_params=pltpu.CompilerParams(
            dimension_semantics=("parallel", "parallel"),
            vmem_limit_bytes=_VMEM_LIMIT_BYTES,
        ),
        cost_estimate=pl.CostEstimate(
            flops=2 * n_pad * s_pad * D,
            transcendentals=n_pad * s_pad,
            bytes_accessed=(n_pad * D + s_pad * D + n_pad * s_pad) * 4,
        ),
    )(x1_mm, x2t_mm, gx1, gx2)
    return out[:N, :S]


# ---------------------------------------------------------------------------
# Fused full-model forward: sigmoid(sum_j alphas_j*yis_j*K[:, j] + intercept)
# ---------------------------------------------------------------------------
def _svm_fused_kernel(b_ref, x_ref, xt_ref, gx_ref, gxi_ref, w_ref,
                      o_ref, acc_ref):
    j = pl.program_id(1)

    @pl.when(j == 0)
    def _():
        acc_ref[...] = jnp.zeros_like(acc_ref)

    cross = jnp.dot(x_ref[...], xt_ref[...],
                    preferred_element_type=jnp.float32)          # (tn, ts) MXU
    expo = jnp.minimum(gx_ref[...] + gxi_ref[...] + cross, 0.0)  # VALU
    k = jnp.exp(expo)                                            # EUP (f32, exact)
    # Weighted partial reduction over this SV tile (padded SVs have w == 0);
    # mul on VALU + lane-reduce on XLU, both hidden under the EUP exp.
    acc_ref[...] += jnp.sum(k * w_ref[...], axis=1, keepdims=True)

    @pl.when(j == pl.num_programs(1) - 1)
    def _():
        logits = acc_ref[...] + b_ref[0]
        o_ref[...] = jax.nn.sigmoid(logits).astype(o_ref.dtype)


def svm_forward_pallas(x, alphas, xis, yis, intercept, gamma, *, tn=None, ts=None):
    """Fused DifferentiableRBFSVMModel.forward. Returns shape (1, N)."""
    x = jnp.asarray(x)
    if x.ndim == 1:
        x = x[None, :]
    xis = jnp.asarray(xis)
    N, D = x.shape
    S, D2 = xis.shape
    assert D == D2, "feature dims must match"

    tn, ts = _pick_tiles(N, S, tn, ts)
    n_pad = _round_up(N, tn)
    s_pad = _round_up(S, ts)

    g = jnp.float32(gamma)
    x_f = x.astype(jnp.float32)
    xis_f = xis.astype(jnp.float32)

    # Hoisted once in the wrapper (never recomputed per tile):
    x_mm = jnp.pad(x, ((0, n_pad - N), (0, 0)))
    xt_mm = jnp.pad(((2.0 * g) * xis_f.T).astype(x.dtype),
                    ((0, 0), (0, s_pad - S)))
    gx = jnp.pad(-g * jnp.sum(x_f * x_f, axis=1, keepdims=True),
                 ((0, n_pad - N), (0, 0)))
    gxi = jnp.pad((-g * jnp.sum(xis_f * xis_f, axis=1))[None, :],
                  ((0, 0), (0, s_pad - S)))
    w = jnp.pad((jnp.asarray(alphas, jnp.float32) *
                 jnp.asarray(yis, jnp.float32))[None, :],
                ((0, 0), (0, s_pad - S)))
    b = jnp.asarray(intercept, jnp.float32).reshape((1,))

    grid = (n_pad // tn, s_pad // ts)
    out = pl.pallas_call(
        _svm_fused_kernel,
        out_shape=jax.ShapeDtypeStruct((n_pad, 1), jnp.float32),
        grid=grid,
        in_specs=[
            pl.BlockSpec(memory_space=pltpu.MemorySpace.SMEM),   # intercept
            pl.BlockSpec((tn, D), lambda i, j: (i, 0)),          # x
            pl.BlockSpec((D, ts), lambda i, j: (0, j)),          # (2*gamma)*xis^T
            pl.BlockSpec((tn, 1), lambda i, j: (i, 0)),          # -gamma*||x||^2
            pl.BlockSpec((1, ts), lambda i, j: (0, j)),          # -gamma*||xis||^2
            pl.BlockSpec((1, ts), lambda i, j: (0, j)),          # alphas*yis
        ],
        out_specs=pl.BlockSpec((tn, 1), lambda i, j: (i, 0)),
        scratch_shapes=[pltpu.VMEM((tn, 1), jnp.float32)],
        compiler_params=pltpu.CompilerParams(
            dimension_semantics=("parallel", "arbitrary"),
            vmem_limit_bytes=_VMEM_LIMIT_BYTES,
        ),
        cost_estimate=pl.CostEstimate(
            flops=2 * n_pad * s_pad * (D + 1),
            transcendentals=n_pad * s_pad + n_pad,
            bytes_accessed=(n_pad * D + s_pad * D + 2 * s_pad + 2 * n_pad) * 4,
        ),
    )(b, x_mm, xt_mm, gx, gxi, w)

    return out[:N, 0][None, :]   # == res.unsqueeze(0)


# ---------------------------------------------------------------------------
# Pure-JAX references (match the PyTorch forward exactly)
# ---------------------------------------------------------------------------
def rbf_kernel_ref(x1, x2, gamma):
    diff = x1[:, None, :].astype(jnp.float32) - x2[None, :, :].astype(jnp.float32)
    dist = jnp.sum(diff * diff, axis=2)
    return jnp.exp(-gamma * dist)


def svm_forward_ref(x, alphas, xis, yis, intercept, gamma):
    k = rbf_kernel_ref(x, xis, gamma)
    res = jnp.sum(alphas * yis * k, axis=1) + intercept
    return jax.nn.sigmoid(res)[None, :]


if __name__ == "__main__":
    key = jax.random.PRNGKey(0)
    k1, k2, k3, k4, k5 = jax.random.split(key, 5)

    # Small shapes consistent with the module: N samples, S support vectors, D features.
    N, S, D = 16, 8, 32
    gamma = 0.5

    x = jax.random.normal(k1, (N, D), dtype=jnp.float32)
    xis = jax.random.normal(k2, (S, D), dtype=jnp.float32)
    alphas = jax.random.uniform(k3, (S,), dtype=jnp.float32)
    yis = jnp.where(jax.random.bernoulli(k4, 0.5, (S,)), 1.0, -1.0).astype(jnp.float32)
    intercept = jax.random.normal(k5, (), dtype=jnp.float32)

    # 1) RBF kernel matrix.
    k_mat = jax.block_until_ready(rbf_kernel_pallas(x, xis, gamma))
    k_ref = rbf_kernel_ref(x, xis, gamma)
    assert k_mat.shape == (N, S)
    assert jnp.allclose(k_mat, k_ref, atol=1e-5, rtol=1e-5), (
        "RBF mismatch: max abs err = %e" % float(jnp.max(jnp.abs(k_mat - k_ref))))

    # 2) Fused full-model forward.
    out = jax.block_until_ready(
        svm_forward_pallas(x, alphas, xis, yis, intercept, gamma))
    ref = svm_forward_ref(x, alphas, xis, yis, intercept, gamma)
    assert out.shape == (1, N)
    assert jnp.allclose(out, ref, atol=1e-5, rtol=1e-5), (
        "SVM forward mismatch: max abs err = %e"
        % float(jnp.max(jnp.abs(out - ref))))

    # 3) 1-D input path (x.dim() == 1 branch of the PyTorch forward).
    out1 = jax.block_until_ready(
        svm_forward_pallas(x[0], alphas, xis, yis, intercept, gamma))
    ref1 = svm_forward_ref(x[:1], alphas, xis, yis, intercept, gamma)
    assert out1.shape == (1, 1)
    assert jnp.allclose(out1, ref1, atol=1e-5, rtol=1e-5)

    print("KERNEL_OK")
</pallas_src>

<mosaic_0001>
module attributes {stable_mosaic.version = 11 : i64} {
  func.func @_rbf_tile_kernel(%arg0: i32, %arg1: i32, %arg2: memref<16x32xf32, #tpu.memory_space<vmem>>, %arg3: memref<32x128xf32, #tpu.memory_space<vmem>>, %arg4: memref<16x1xf32, #tpu.memory_space<vmem>>, %arg5: memref<1x128xf32, #tpu.memory_space<vmem>>, %arg6: memref<16x128xf32, #tpu.memory_space<vmem>>) attributes {dimension_semantics = [#tpu.dimension_semantics<parallel>, #tpu.dimension_semantics<parallel>], iteration_bounds = array<i64: 1, 1>, scalar_prefetch = 0 : i64, scratch_operands = 0 : i64, tpu.core_type = #tpu.core_type<tc>, window_params = [{transform_indices = @transform_0, window_bounds = array<i64: 16, 32>}, {transform_indices = @transform_1, window_bounds = array<i64: 32, 128>}, {transform_indices = @transform_2, window_bounds = array<i64: 16, 1>}, {transform_indices = @transform_3, window_bounds = array<i64: 1, 128>}, {transform_indices = @transform_4, window_bounds = array<i64: 16, 128>}]} {
    %c0 = arith.constant 0 : index
    %c0_0 = arith.constant 0 : index
    %0 = vector.load %arg2[%c0, %c0_0] : memref<16x32xf32, #tpu.memory_space<vmem>>, vector<16x32xf32>
    %c0_1 = arith.constant 0 : index
    %c0_2 = arith.constant 0 : index
    %1 = vector.load %arg3[%c0_1, %c0_2] : memref<32x128xf32, #tpu.memory_space<vmem>>, vector<32x128xf32>
    %cst = arith.constant dense<0.000000e+00> : vector<16x128xf32>
    %2 = tpu.matmul %0, %1, %cst {dimension_numbers = #tpu.dot_dimension_numbers<[1], [0], [0], [1], [0, 0, 1, 1], [], []>} : vector<16x32xf32>, vector<32x128xf32>, vector<16x128xf32> -> vector<16x128xf32>
    %c0_3 = arith.constant 0 : index
    %c0_4 = arith.constant 0 : index
    %3 = vector.load %arg4[%c0_3, %c0_4] : memref<16x1xf32, #tpu.memory_space<vmem>>, vector<16x1xf32>
    %c0_5 = arith.constant 0 : index
    %c0_6 = arith.constant 0 : index
    %4 = vector.load %arg5[%c0_5, %c0_6] : memref<1x128xf32, #tpu.memory_space<vmem>>, vector<1x128xf32>
    %5 = vector.broadcast %3 : vector<16x1xf32> to vector<16x128xf32>
    %6 = vector.broadcast %4 : vector<1x128xf32> to vector<16x128xf32>
    %7 = arith.addf %5, %6 : vector<16x128xf32>
    %8 = arith.addf %7, %2 : vector<16x128xf32>
    %cst_7 = arith.constant 0.000000e+00 : f32
    %9 = vector.broadcast %cst_7 : f32 to vector<16x128xf32>
    %10 = arith.minimumf %8, %9 : vector<16x128xf32>
    %11 = math.exp %10 : vector<16x128xf32>
    %c0_8 = arith.constant 0 : index
    %c0_9 = arith.constant 0 : index
    %12 = vector.load %arg6[%c0_8, %c0_9] : memref<16x128xf32, #tpu.memory_space<vmem>>, vector<16x128xf32>
    tpu.vector_store %arg6[%c0_8, %c0_9], %11 {strides = array<i32>} : memref<16x128xf32, #tpu.memory_space<vmem>>, vector<16x128xf32>,
    return
  }
  func.func @transform_0(%arg0: i32, %arg1: i32) -> (i32, i32) {
    %c0_i32 = arith.constant 0 : i32
    %c0_i32_0 = arith.constant 0 : i32
    return %arg0, %c0_i32 : i32, i32
  }
  func.func @transform_1(%arg0: i32, %arg1: i32) -> (i32, i32) {
    %c0_i32 = arith.constant 0 : i32
    %c0_i32_0 = arith.constant 0 : i32
    return %c0_i32, %arg1 : i32, i32
  }
  func.func @transform_2(%arg0: i32, %arg1: i32) -> (i32, i32) {
    %c0_i32 = arith.constant 0 : i32
    %c0_i32_0 = arith.constant 0 : i32
    return %arg0, %c0_i32 : i32, i32
  }
  func.func @transform_3(%arg0: i32, %arg1: i32) -> (i32, i32) {
    %c0_i32 = arith.constant 0 : i32
    %c0_i32_0 = arith.constant 0 : i32
    return %c0_i32, %arg1 : i32, i32
  }
  func.func @transform_4(%arg0: i32, %arg1: i32) -> (i32, i32) {
    %c0_i32 = arith.constant 0 : i32
    return %arg0, %arg1 : i32, i32
  }
}

</mosaic_0001>

<bundles_post_ra>
// kernel: tpu_custom_call.1
= control target key start
LH: loop header
LB: loop body
LE: loop exit
PB: predicated region body
PF: predicated region fallthrough
CT: control target
= control target key end

     0   :  { %9 = vsyncpa [#allocation3], 0  ;;  %s301_s0 = inlined_call_operand.vmem [shape: f32[16,32], index: 0, kind: input, shape index: {}]   ;;  %s302_s1 = inlined_call_operand.hbm [shape: f32[32,128], index: 1, kind: input, shape index: {}]   ;;  %s303_s2 = inlined_call_operand.vmem [shape: f32[16,1], index: 2, kind: input, shape index: {}]   ;;  %s304_s3 = inlined_call_operand.vmem [shape: f32[1,128], index: 3, kind: input, shape index: {}]   ;;  %s305_s4 = inlined_call_operand.hbm [shape: f32[16,128], index: 4, kind: output, shape index: {}]  }
   0x1   :  { %10 = vsyncpa [#allocation4], 0  ;;  %s242_s15 = smov [#allocation2]  }
   0x2   :  { %s18_s16 = sshll.u32 %s242_s15, 4  ;;  %s19_s16 = int_to_ptr.vmem [resolvable:$true] %s18_s16 }
   0x3   :  { %s206_s17 = scalar_lea.vmem %s19_s16, 512  ;;  %p211_p1 = scmp.lt.s32.totalorder %s19_s16, %s19_s16 }
   0x4   :  { %p207_p0 = scmp.ne.s32.totalorder %s19_s16, %s206_s17  ;;  %p212_p2 = scmp.lt.s32.totalorder %s206_s17, %s206_s17 }
   0x6   :  { %p213_p3 = por %p212_p2, %p211_p1 }
   0x8   :  { %p214_p4 = pnand %p213_p3, %p207_p0 }
   0xa   :  { %217 = shalt.err (!%p214_p4)
}
   0xb   :  { %s243_s18 = smov 128   ;;  %s244_s19 = smov 8  }
   0xc   :  { %24 = dma.hbm_to_vmem [thread:$0]  %s302_s1, 512, %s19_s16, [#allocation3], %s243_s18, %s243_s18, %s244_s19  }
   0xd   :  { %238 = dma.done.wait [#allocation3], 512  }
   0xe   :  { %239 = vsyncadd [#allocation3], 4294966784  ;;  %v245_v0 = vmov 0   ;;  %vm38_vm0 = vcmask 261120   ;;  %v37_v1 = vld [vmem:[#allocation2 + $0x18] sm:$0xff]  ;;  %v36_v2 = vld [vmem:[#allocation2 + $0x10] sm:$0xff] }
   0xf   :  { %193 = vset.pattern.permute.xlu0 %v245_v0  ;;  %177 = vmatprep.subr.mxu0 %v37_v1  ;;  %v32_v3 = vld [vmem:[%s301_s0] sm:$0xff]  ;;  %v35_v4 = vld [vmem:[#allocation2 + $0x8] sm:$0xff] }
  0x10   :  { %178 = vmatpush3.msra.mxu0 %v37_v1  ;;  %185 = vmatprep.mubr.msk.f32.mxu0 %vm38_vm0, %v32_v3  ;;  %v120_v5 = vld [vmem:[%s303_s2] sm:$0xff]  ;;  %v121_v7 = vld [vmem:[%s303_s2 + $0x8] sm:$0xff] }
  0x11   :  { %179 = vmatprep.subr.mxu0 %v36_v2  ;;  %125 = vperm.xlu0 %193, %v120_v5   ;;  %v34_v6 = vld [vmem:[#allocation2] sm:$0xff]  ;;  %v33_v8 = vld [vmem:[%s301_s0 + $0x8] sm:$0xff]  ;;  %s246_s0 = smov [#allocation5]  }
  0x12   :  { %180 = vmatpush3.msra.mxu0 %v36_v2  ;;  %v170_v10 = vld [vmem:[%s304_s3] ss:$0 sm:$0xff]  ;;  %s156_s2 = sshll.u32 %s246_s0, 4  ;;  %s157_s2 = int_to_ptr.vmem [resolvable:$true] %s156_s2 }
  0x13   :  { %181 = vmatprep.subr.mxu0 %v35_v4  ;;  %s218_s3 = scalar_lea.vmem %s157_s2, 256  ;;  %p223_p6 = scmp.lt.s32.totalorder %s157_s2, %s157_s2 }
  0x14   :  { %182 = vmatpush3.msra.mxu0 %v35_v4  ;;  %p219_p5 = scmp.ne.s32.totalorder %s157_s2, %s218_s3  ;;  %p224_p7 = scmp.lt.s32.totalorder %s218_s3, %s218_s3 }
  0x15   :  { %183 = vmatprep.subr.mxu0 %v34_v6  ;;  %130 = vperm.xlu0 %193, %v121_v7  }
  0x16   :  { %184 = vmatpush3.msra.mxu0 %v34_v6  ;;  %p225_p8 = por %p224_p7, %p223_p6 }
  0x17   :  { %186 = vmatmul.mubr.msk.f32.vlgmr.msra.gmra.mxu0 %vm38_vm0, %v33_v8 }
  0x18   :  { %p226_p9 = pnand %p225_p8, %p219_p5 }
  0x8c   :  { %v126_v9 = vpop.permute.xlu0 %125 }
  0x8d   :  { %v139_v14 = vadd.f32 %v170_v10, %v126_v9 }
  0x90   :  { %v131_v11 = vpop.permute.xlu0 %130 }
  0x91   :  { %v140_v12 = vadd.f32 %v170_v10, %v131_v11 }
  0xd7   :  { %v187_v13 = vpop.f32.mrf.mxu0 }
  0xd8   :  { %v142_v15 = vadd.f32 %v187_v13, %v140_v12 }
  0xd9   :  { %v111_v16 = vpop.f32.mrf.mxu0 }
  0xda   :  { %v144_v17 = vmin.f32 %v142_v15, 0.0  ;;  %v141_v18 = vadd.f32 %v139_v14, %v111_v16 }
  0xdc   :  { %v147_v19 = vmul.f32 1.442695, %v144_v17  ;;  %v143_v20 = vmin.f32 %v141_v18, 0.0 }
  0xde   :  { %194 = vpow2.f32 %v147_v19  ;;  %v145_v21 = vmul.f32 1.442695, %v143_v20 }
  0xe0   :  { %196 = vpow2.f32 %v145_v21 }
  0xeb   :  { %v195_v22 = vpop.eup %194 }
  0xec   :  { %150 = vst [vmem:[#allocation5 + $0x8] sm:$0xff] %v195_v22 }
  0xed   :  { %v197_v23 = vpop.eup %196 }
  0xee   :  { %149 = vst [vmem:[#allocation5] sm:$0xff] %v197_v23 }
  0xef   :  { %229 = shalt.err (!%p226_p9)
}
  0xf0   :  { %162 = dma.vmem_to_hbm [thread:$0]  %s157_s2, 256, %s305_s4, [#allocation4], %s243_s18, %s243_s18, %s244_s19  }
  0xf1   :  { %240 = dma.done.wait [#allocation4], 256  }
  0xf2   :  { %241 = vsyncadd [#allocation4], 4294967040 }
  0xf3   :  { %166 = vsyncpa [#allocation3], 1 }
  0xf4   :  { %167 = vsyncpa [#allocation4], 1 }

</bundles_post_ra>
